<compile_context>
chip_gen: v7x
topology: tpu7x:2x2x1
jax: 0.10.0
libtpu: 0.0.40
codegen_flags: <defaults>
</compile_context>

<pallas_src>
import numpy as np
import jax
import jax.numpy as jnp
from jax.experimental import pallas as pl
from jax.experimental.pallas import tpu as pltpu

MAP_SIZE = 11                      # default map_size of intrinsic_model
N_IN = 3                           # input channels
N_C1, N_C2 = 16, 16                # conv filter counts
K1, K2 = 3, 3                      # conv kernel sizes
HO1 = MAP_SIZE - K1 + 1            # 9
HO2 = HO1 - K2 + 1                 # 7
LIN_IN = N_C2 * HO2 * HO2          # 784
HID = 256
LANE = 128                         # TPU lane width

# "extended" flattened widths: the row stride stays MAP_SIZE=11 through both
# convs; columns whose x-offset >= valid width are junk (always finite) and are
# masked by zero entries of the folded head weight.
E1 = (HO1 - 1) * MAP_SIZE + HO1    # 97  (conv1 out; reads x cols up to 24+96=120)
E2 = (HO2 - 1) * MAP_SIZE + HO2    # 73  (conv2 out; reads h1 cols up to 24+72=96)

_SMEM = pl.BlockSpec(memory_space=pltpu.MemorySpace.SMEM)


# ---------------- fused Pallas kernel (one grid step = one sample) ----------------

def _fused_kernel(act_ref, hc_ref,            # SMEM: (B,), (2,) = [w_action, bias]
                  x_ref,                      # (1, 3, 121) f32
                  w1_ref, b1_ref,             # (9, 16, 3) f32, (16, 1) f32
                  w2_ref, b2_ref,             # (16, 144) bf16, (16, 1) f32
                  wc_ref,                     # (16, 73) f32  folded linear1@linear2
                  o_ref):                     # (1, 1, 128) f32
    b = pl.program_id(0)
    x = x_ref[0]                               # (3, 121) f32

    # ---- conv1 (+bias, ELU): 9 K=3 taps; 3 independent accumulators ---------
    parts = [None, None, None]
    for t in range(K1 * K1):
        dy, dx = divmod(t, K1)
        s = dy * MAP_SIZE + dx
        d = jnp.dot(w1_ref[t], x[:, s:s + E1], preferred_element_type=jnp.float32)
        i = t % 3
        parts[i] = d if parts[i] is None else parts[i] + d
    a1 = (parts[0] + parts[1]) + (parts[2] + b1_ref[...])
    # ELU(alpha=1); exp(x)-1 matches the f32 reference within ULPs of expm1.
    h1 = jnp.where(a1 > 0.0, a1, jnp.exp(a1) - 1.0)             # (16, 97) f32

    # ---- conv2 (+bias, ELU): all 9 taps fused into one K=144 MXU matmul -----
    slabs = [h1[:, dy * MAP_SIZE + dx: dy * MAP_SIZE + dx + E2]
             for dy in range(K2) for dx in range(K2)]            # 9 x (16, 73)
    stacked = jnp.concatenate(slabs, axis=0).astype(jnp.bfloat16)  # (144, 73)
    a2 = jnp.dot(w2_ref[...], stacked,
                 preferred_element_type=jnp.float32) + b2_ref[...]
    h2 = jnp.where(a2 > 0.0, a2, jnp.exp(a2) - 1.0)             # (16, 73) f32

    # ---- folded linear1->linear2 head (junk lanes hit zero wc rows) + clamp --
    row = jnp.sum(h2 * wc_ref[...], axis=1, keepdims=True)       # (16, 1)
    tot = jnp.sum(row, axis=0, keepdims=True)                    # (1, 1)
    val = tot + act_ref[b] * hc_ref[0] + hc_ref[1]
    val = jnp.clip(val, -2.0, 2.0)
    o_ref[...] = jnp.broadcast_to(val.reshape(1, 1, 1), (1, 1, LANE))


# ---------------- one-time parameter repacking ----------------

def prepare_params(params):
    """One-time repack of PyTorch-layout parameters into the kernel layout."""
    w1, b1, w2, b2, wl1, bl1, wl2, bl2 = params

    # conv1 taps: t = dy*K1 + dx -> (Cout, Cin) f32 matrix
    w1_taps = jnp.transpose(w1, (2, 3, 0, 1)).reshape(K1 * K1, N_C1, N_IN)
    b1_col = b1.reshape(N_C1, 1)

    # conv2: all 9 taps concatenated along K; row r = (dy*K2+dx)*N_C1 + c_in,
    # matching the in-kernel concat order.  Stored permanently in bf16.
    w2_stack = (jnp.transpose(w2, (2, 3, 1, 0))
                .reshape(K2 * K2 * N_C1, N_C2).T.astype(jnp.bfloat16))   # (16, 144)
    b2_col = b2.reshape(N_C2, 1)

    # Fold linear1 and linear2 (the model has NO activation between them):
    #   out = flat @ (wl1.T @ wl2_x.T) + action*wl2[0,0] + (bl1 @ wl2_x.T + bl2)
    wl2_x = wl2[:, 1:]                                      # (1, 256)
    w_comb = (wl1.T @ wl2_x.T).reshape(N_C2, HO2, HO2)      # (16, 7, 7) f32
    # scatter into the kernel's extended conv2 layout; junk lanes stay zero
    lane = (np.arange(HO2)[:, None] * MAP_SIZE
            + np.arange(HO2)[None, :]).reshape(-1)          # (49,) column indices
    wc_ext = jnp.zeros((N_C2, E2), jnp.float32)
    wc_ext = wc_ext.at[:, lane].set(w_comb.reshape(N_C2, HO2 * HO2))

    head_consts = jnp.stack(
        [wl2[0, 0], jnp.dot(bl1, wl2_x[0]) + bl2[0]]).astype(jnp.float32)  # (2,)
    return (w1_taps, b1_col, w2_stack, b2_col, wc_ext, head_consts)


# ---------------- wrappers ----------------

def intrinsic_forward_batched(states, actions, prepped):
    """states: (B, 3, 11, 11) f32, actions: (B, 1) f32 -> (B, 1) f32."""
    w1_taps, b1_col, w2_stack, b2_col, wc_ext, head_consts = prepped
    B = states.shape[0]
    x_flat = states.reshape(B, N_IN, MAP_SIZE * MAP_SIZE).astype(jnp.float32)
    acts = actions.reshape(B).astype(jnp.float32)

    out = pl.pallas_call(
        _fused_kernel,
        out_shape=jax.ShapeDtypeStruct((B, 1, LANE), jnp.float32),
        grid=(B,),
        in_specs=[
            _SMEM,                                                        # actions
            _SMEM,                                                        # head consts
            pl.BlockSpec((1, N_IN, MAP_SIZE * MAP_SIZE), lambda b: (b, 0, 0)),
            # weights: constant index maps -> DMA'd once, stay VMEM-resident
            pl.BlockSpec((K1 * K1, N_C1, N_IN), lambda b: (0, 0, 0)),
            pl.BlockSpec((N_C1, 1), lambda b: (0, 0)),
            pl.BlockSpec((N_C2, K2 * K2 * N_C1), lambda b: (0, 0)),
            pl.BlockSpec((N_C2, 1), lambda b: (0, 0)),
            pl.BlockSpec((N_C2, E2), lambda b: (0, 0)),
        ],
        out_specs=pl.BlockSpec((1, 1, LANE), lambda b: (b, 0, 0)),
        compiler_params=pltpu.CompilerParams(
            dimension_semantics=("parallel",)),
    )(acts, head_consts, x_flat, w1_taps, b1_col, w2_stack, b2_col, wc_ext)
    return out[:, 0, :1]


def intrinsic_forward(state, action, prepped):
    """Module-exact forward: state (3, 11, 11), action (1, 1) -> (1, 1)."""
    return intrinsic_forward_batched(state[None], jnp.reshape(action, (1, 1)), prepped)


# ---------------- pure-JAX reference (correctness check) ----------------

def reference_forward(state, action, params):
    w1, b1, w2, b2, wl1, bl1, wl2, bl2 = params
    dn = ('NCHW', 'OIHW', 'NCHW')
    x = state[None]
    x = jax.lax.conv_general_dilated(x, w1, (1, 1), 'VALID', dimension_numbers=dn)
    x = x + b1[None, :, None, None]
    x = jnp.where(x > 0, x, jnp.exp(x) - 1.0)
    x = jax.lax.conv_general_dilated(x, w2, (1, 1), 'VALID', dimension_numbers=dn)
    x = x + b2[None, :, None, None]
    x = jnp.where(x > 0, x, jnp.exp(x) - 1.0)
    x = x.reshape(1, -1)
    x = x @ wl1.T + bl1
    x = jnp.concatenate([action, x], axis=1)
    x = x @ wl2.T + bl2
    return jnp.clip(x, -2.0, 2.0)


# ---------------- deterministic parameter init (mirrors weights_init) ----------------

def _conv_init(key, shape):
    fan_in = int(np.prod(shape[1:4]))
    fan_out = int(np.prod(shape[2:4])) * shape[0]
    bound = float(np.sqrt(6.0 / (fan_in + fan_out)))
    return jax.random.uniform(key, shape, jnp.float32, -bound, bound)


def _linear_init(key, shape):
    fan_in, fan_out = shape[1], shape[0]
    bound = float(np.sqrt(6.0 / (fan_in + fan_out)))
    return jax.random.uniform(key, shape, jnp.float32, -bound, bound)


def _normalized_columns_init(key, shape, std=0.01):
    w = jax.random.normal(key, shape, jnp.float32)
    return w * (std / jnp.sqrt(jnp.sum(w * w, axis=1, keepdims=True)))


if __name__ == "__main__":
    key = jax.random.PRNGKey(0)
    ks, ka, k1, k2, k3, k4 = jax.random.split(key, 6)

    B = 8
    states = jax.random.normal(ks, (B, N_IN, MAP_SIZE, MAP_SIZE), jnp.float32)
    actions = jax.random.normal(ka, (B, 1), jnp.float32)

    w1 = _conv_init(k1, (N_C1, N_IN, K1, K1))
    b1 = jnp.zeros((N_C1,), jnp.float32)
    w2 = _conv_init(k2, (N_C2, N_C1, K2, K2))
    b2 = jnp.zeros((N_C2,), jnp.float32)
    wl1 = _linear_init(k3, (HID, LIN_IN))
    bl1 = jnp.zeros((HID,), jnp.float32)
    wl2 = _normalized_columns_init(k4, (1, HID + 1), std=0.01)
    bl2 = jnp.zeros((1,), jnp.float32)
    params = (w1, b1, w2, b2, wl1, bl1, wl2, bl2)

    prepped = jax.block_until_ready(prepare_params(params))   # one-time repack

    fwd = jax.jit(intrinsic_forward_batched)
    out = jax.block_until_ready(fwd(states, actions, prepped))
    assert out.shape == (B, 1)

    ref = jnp.concatenate(
        [reference_forward(states[b], actions[b:b + 1], params) for b in range(B)],
        axis=0)
    np.testing.assert_allclose(np.asarray(out), np.asarray(ref), atol=2e-2, rtol=2e-2)

    # module-exact batch-1 interface
    out1 = jax.block_until_ready(intrinsic_forward(states[0], actions[0:1], prepped))
    assert out1.shape == (1, 1)
    np.testing.assert_allclose(np.asarray(out1), np.asarray(ref[0:1]),
                               atol=2e-2, rtol=2e-2)

    print("KERNEL_OK")
</pallas_src>

<mosaic_0001>
module attributes {stable_mosaic.version = 11 : i64} {
  func.func @_fused_kernel(%arg0: i32, %arg1: memref<8xf32, #tpu.memory_space<smem>>, %arg2: memref<2xf32, #tpu.memory_space<smem>>, %arg3: memref<1x3x121xf32, #tpu.memory_space<vmem>>, %arg4: memref<9x16x3xf32, #tpu.memory_space<vmem>>, %arg5: memref<16x1xf32, #tpu.memory_space<vmem>>, %arg6: memref<16x144xbf16, #tpu.memory_space<vmem>>, %arg7: memref<16x1xf32, #tpu.memory_space<vmem>>, %arg8: memref<16x73xf32, #tpu.memory_space<vmem>>, %arg9: memref<1x1x128xf32, #tpu.memory_space<vmem>>) attributes {dimension_semantics = [#tpu.dimension_semantics<parallel>], iteration_bounds = array<i64: 8>, scalar_prefetch = 0 : i64, scratch_operands = 0 : i64, tpu.core_type = #tpu.core_type<tc>, window_params = [{transform_indices = @transform_0, window_bounds = array<i64: 8>}, {transform_indices = @transform_1, window_bounds = array<i64: 2>}, {transform_indices = @transform_2, window_bounds = array<i64: 1, 3, 121>}, {pipeline_mode = #tpu.pipeline_mode<synchronous>, transform_indices = @transform_3, window_bounds = array<i64: 9, 16, 3>}, {pipeline_mode = #tpu.pipeline_mode<synchronous>, transform_indices = @transform_4, window_bounds = array<i64: 16, 1>}, {pipeline_mode = #tpu.pipeline_mode<synchronous>, transform_indices = @transform_5, window_bounds = array<i64: 16, 144>}, {pipeline_mode = #tpu.pipeline_mode<synchronous>, transform_indices = @transform_6, window_bounds = array<i64: 16, 1>}, {pipeline_mode = #tpu.pipeline_mode<synchronous>, transform_indices = @transform_7, window_bounds = array<i64: 16, 73>}, {transform_indices = @transform_8, window_bounds = array<i64: 1, 1, 128>}]} {
    %c0 = arith.constant 0 : index
    %c0_0 = arith.constant 0 : index
    %c0_1 = arith.constant 0 : index
    %0 = vector.load %arg3[%c0, %c0_0, %c0_1] : memref<1x3x121xf32, #tpu.memory_space<vmem>>, vector<1x3x121xf32>
    %1 = vector.shape_cast %0 : vector<1x3x121xf32> to vector<3x121xf32>
    %c0_2 = arith.constant 0 : index
    %c0_3 = arith.constant 0 : index
    %c0_4 = arith.constant 0 : index
    %2 = vector.load %arg4[%c0_2, %c0_3, %c0_4] : memref<9x16x3xf32, #tpu.memory_space<vmem>>, vector<1x16x3xf32>
    %3 = vector.shape_cast %2 : vector<1x16x3xf32> to vector<16x3xf32>
    %4 = vector.extract_strided_slice %1 {offsets = [0, 0], sizes = [3, 97], strides = [1, 1]} : vector<3x121xf32> to vector<3x97xf32>
    %cst = arith.constant dense<0.000000e+00> : vector<16x97xf32>
    %5 = tpu.matmul %3, %4, %cst {dimension_numbers = #tpu.dot_dimension_numbers<[1], [0], [0], [1], [0, 0, 1, 1], [], []>} : vector<16x3xf32>, vector<3x97xf32>, vector<16x97xf32> -> vector<16x97xf32>
    %c1 = arith.constant 1 : index
    %c0_5 = arith.constant 0 : index
    %c0_6 = arith.constant 0 : index
    %6 = vector.load %arg4[%c1, %c0_5, %c0_6] : memref<9x16x3xf32, #tpu.memory_space<vmem>>, vector<1x16x3xf32>
    %7 = vector.shape_cast %6 : vector<1x16x3xf32> to vector<16x3xf32>
    %8 = vector.extract_strided_slice %1 {offsets = [0, 1], sizes = [3, 97], strides = [1, 1]} : vector<3x121xf32> to vector<3x97xf32>
    %cst_7 = arith.constant dense<0.000000e+00> : vector<16x97xf32>
    %9 = tpu.matmul %7, %8, %cst_7 {dimension_numbers = #tpu.dot_dimension_numbers<[1], [0], [0], [1], [0, 0, 1, 1], [], []>} : vector<16x3xf32>, vector<3x97xf32>, vector<16x97xf32> -> vector<16x97xf32>
    %c2 = arith.constant 2 : index
    %c0_8 = arith.constant 0 : index
    %c0_9 = arith.constant 0 : index
    %10 = vector.load %arg4[%c2, %c0_8, %c0_9] : memref<9x16x3xf32, #tpu.memory_space<vmem>>, vector<1x16x3xf32>
    %11 = vector.shape_cast %10 : vector<1x16x3xf32> to vector<16x3xf32>
    %12 = vector.extract_strided_slice %1 {offsets = [0, 2], sizes = [3, 97], strides = [1, 1]} : vector<3x121xf32> to vector<3x97xf32>
    %cst_10 = arith.constant dense<0.000000e+00> : vector<16x97xf32>
    %13 = tpu.matmul %11, %12, %cst_10 {dimension_numbers = #tpu.dot_dimension_numbers<[1], [0], [0], [1], [0, 0, 1, 1], [], []>} : vector<16x3xf32>, vector<3x97xf32>, vector<16x97xf32> -> vector<16x97xf32>
    %c3 = arith.constant 3 : index
    %c0_11 = arith.constant 0 : index
    %c0_12 = arith.constant 0 : index
    %14 = vector.load %arg4[%c3, %c0_11, %c0_12] : memref<9x16x3xf32, #tpu.memory_space<vmem>>, vector<1x16x3xf32>
    %15 = vector.shape_cast %14 : vector<1x16x3xf32> to vector<16x3xf32>
    %16 = vector.extract_strided_slice %1 {offsets = [0, 11], sizes = [3, 97], strides = [1, 1]} : vector<3x121xf32> to vector<3x97xf32>
    %cst_13 = arith.constant dense<0.000000e+00> : vector<16x97xf32>
    %17 = tpu.matmul %15, %16, %cst_13 {dimension_numbers = #tpu.dot_dimension_numbers<[1], [0], [0], [1], [0, 0, 1, 1], [], []>} : vector<16x3xf32>, vector<3x97xf32>, vector<16x97xf32> -> vector<16x97xf32>
    %18 = arith.addf %5, %17 : vector<16x97xf32>
    %c4 = arith.constant 4 : index
    %c0_14 = arith.constant 0 : index
    %c0_15 = arith.constant 0 : index
    %19 = vector.load %arg4[%c4, %c0_14, %c0_15] : memref<9x16x3xf32, #tpu.memory_space<vmem>>, vector<1x16x3xf32>
    %20 = vector.shape_cast %19 : vector<1x16x3xf32> to vector<16x3xf32>
    %21 = vector.extract_strided_slice %1 {offsets = [0, 12], sizes = [3, 97], strides = [1, 1]} : vector<3x121xf32> to vector<3x97xf32>
    %cst_16 = arith.constant dense<0.000000e+00> : vector<16x97xf32>
    %22 = tpu.matmul %20, %21, %cst_16 {dimension_numbers = #tpu.dot_dimension_numbers<[1], [0], [0], [1], [0, 0, 1, 1], [], []>} : vector<16x3xf32>, vector<3x97xf32>, vector<16x97xf32> -> vector<16x97xf32>
    %23 = arith.addf %9, %22 : vector<16x97xf32>
    %c5 = arith.constant 5 : index
    %c0_17 = arith.constant 0 : index
    %c0_18 = arith.constant 0 : index
    %24 = vector.load %arg4[%c5, %c0_17, %c0_18] : memref<9x16x3xf32, #tpu.memory_space<vmem>>, vector<1x16x3xf32>
    %25 = vector.shape_cast %24 : vector<1x16x3xf32> to vector<16x3xf32>
    %26 = vector.extract_strided_slice %1 {offsets = [0, 13], sizes = [3, 97], strides = [1, 1]} : vector<3x121xf32> to vector<3x97xf32>
    %cst_19 = arith.constant dense<0.000000e+00> : vector<16x97xf32>
    %27 = tpu.matmul %25, %26, %cst_19 {dimension_numbers = #tpu.dot_dimension_numbers<[1], [0], [0], [1], [0, 0, 1, 1], [], []>} : vector<16x3xf32>, vector<3x97xf32>, vector<16x97xf32> -> vector<16x97xf32>
    %28 = arith.addf %13, %27 : vector<16x97xf32>
    %c6 = arith.constant 6 : index
    %c0_20 = arith.constant 0 : index
    %c0_21 = arith.constant 0 : index
    %29 = vector.load %arg4[%c6, %c0_20, %c0_21] : memref<9x16x3xf32, #tpu.memory_space<vmem>>, vector<1x16x3xf32>
    %30 = vector.shape_cast %29 : vector<1x16x3xf32> to vector<16x3xf32>
    %31 = vector.extract_strided_slice %1 {offsets = [0, 22], sizes = [3, 97], strides = [1, 1]} : vector<3x121xf32> to vector<3x97xf32>
    %cst_22 = arith.constant dense<0.000000e+00> : vector<16x97xf32>
    %32 = tpu.matmul %30, %31, %cst_22 {dimension_numbers = #tpu.dot_dimension_numbers<[1], [0], [0], [1], [0, 0, 1, 1], [], []>} : vector<16x3xf32>, vector<3x97xf32>, vector<16x97xf32> -> vector<16x97xf32>
    %33 = arith.addf %18, %32 : vector<16x97xf32>
    %c7 = arith.constant 7 : index
    %c0_23 = arith.constant 0 : index
    %c0_24 = arith.constant 0 : index
    %34 = vector.load %arg4[%c7, %c0_23, %c0_24] : memref<9x16x3xf32, #tpu.memory_space<vmem>>, vector<1x16x3xf32>
    %35 = vector.shape_cast %34 : vector<1x16x3xf32> to vector<16x3xf32>
    %36 = vector.extract_strided_slice %1 {offsets = [0, 23], sizes = [3, 97], strides = [1, 1]} : vector<3x121xf32> to vector<3x97xf32>
    %cst_25 = arith.constant dense<0.000000e+00> : vector<16x97xf32>
    %37 = tpu.matmul %35, %36, %cst_25 {dimension_numbers = #tpu.dot_dimension_numbers<[1], [0], [0], [1], [0, 0, 1, 1], [], []>} : vector<16x3xf32>, vector<3x97xf32>, vector<16x97xf32> -> vector<16x97xf32>
    %38 = arith.addf %23, %37 : vector<16x97xf32>
    %c8 = arith.constant 8 : index
    %c0_26 = arith.constant 0 : index
    %c0_27 = arith.constant 0 : index
    %39 = vector.load %arg4[%c8, %c0_26, %c0_27] : memref<9x16x3xf32, #tpu.memory_space<vmem>>, vector<1x16x3xf32>
    %40 = vector.shape_cast %39 : vector<1x16x3xf32> to vector<16x3xf32>
    %41 = vector.extract_strided_slice %1 {offsets = [0, 24], sizes = [3, 97], strides = [1, 1]} : vector<3x121xf32> to vector<3x97xf32>
    %cst_28 = arith.constant dense<0.000000e+00> : vector<16x97xf32>
    %42 = tpu.matmul %40, %41, %cst_28 {dimension_numbers = #tpu.dot_dimension_numbers<[1], [0], [0], [1], [0, 0, 1, 1], [], []>} : vector<16x3xf32>, vector<3x97xf32>, vector<16x97xf32> -> vector<16x97xf32>
    %43 = arith.addf %28, %42 : vector<16x97xf32>
    %44 = arith.addf %33, %38 : vector<16x97xf32>
    %c0_29 = arith.constant 0 : index
    %c0_30 = arith.constant 0 : index
    %45 = vector.load %arg5[%c0_29, %c0_30] : memref<16x1xf32, #tpu.memory_space<vmem>>, vector<16x1xf32>
    %46 = vector.broadcast %45 : vector<16x1xf32> to vector<16x97xf32>
    %47 = arith.addf %43, %46 : vector<16x97xf32>
    %48 = arith.addf %44, %47 : vector<16x97xf32>
    %cst_31 = arith.constant 0.000000e+00 : f32
    %49 = vector.broadcast %cst_31 : f32 to vector<16x97xf32>
    %50 = arith.cmpf ogt, %48, %49 : vector<16x97xf32>
    %51 = math.exp %48 : vector<16x97xf32>
    %cst_32 = arith.constant 1.000000e+00 : f32
    %52 = vector.broadcast %cst_32 : f32 to vector<16x97xf32>
    %53 = arith.subf %51, %52 : vector<16x97xf32>
    %54 = arith.select %50, %48, %53 : vector<16x97xi1>, vector<16x97xf32>
    %55 = vector.extract_strided_slice %54 {offsets = [0, 0], sizes = [16, 73], strides = [1, 1]} : vector<16x97xf32> to vector<16x73xf32>
    %56 = vector.extract_strided_slice %54 {offsets = [0, 1], sizes = [16, 73], strides = [1, 1]} : vector<16x97xf32> to vector<16x73xf32>
    %57 = vector.extract_strided_slice %54 {offsets = [0, 2], sizes = [16, 73], strides = [1, 1]} : vector<16x97xf32> to vector<16x73xf32>
    %58 = vector.extract_strided_slice %54 {offsets = [0, 11], sizes = [16, 73], strides = [1, 1]} : vector<16x97xf32> to vector<16x73xf32>
    %59 = vector.extract_strided_slice %54 {offsets = [0, 12], sizes = [16, 73], strides = [1, 1]} : vector<16x97xf32> to vector<16x73xf32>
    %60 = vector.extract_strided_slice %54 {offsets = [0, 13], sizes = [16, 73], strides = [1, 1]} : vector<16x97xf32> to vector<16x73xf32>
    %61 = vector.extract_strided_slice %54 {offsets = [0, 22], sizes = [16, 73], strides = [1, 1]} : vector<16x97xf32> to vector<16x73xf32>
    %62 = vector.extract_strided_slice %54 {offsets = [0, 23], sizes = [16, 73], strides = [1, 1]} : vector<16x97xf32> to vector<16x73xf32>
    %63 = vector.extract_strided_slice %54 {offsets = [0, 24], sizes = [16, 73], strides = [1, 1]} : vector<16x97xf32> to vector<16x73xf32>
    %64 = tpu.concatenate %55, %56, %57, %58, %59, %60, %61, %62, %63 in 0 : vector<16x73xf32>, vector<16x73xf32>, vector<16x73xf32>, vector<16x73xf32>, vector<16x73xf32>, vector<16x73xf32>, vector<16x73xf32>, vector<16x73xf32>, vector<16x73xf32> -> vector<144x73xf32>
    %65 = arith.truncf %64 : vector<144x73xf32> to vector<144x73xbf16>
    %c0_33 = arith.constant 0 : index
    %c0_34 = arith.constant 0 : index
    %66 = vector.load %arg6[%c0_33, %c0_34] : memref<16x144xbf16, #tpu.memory_space<vmem>>, vector<16x144xbf16>
    %cst_35 = arith.constant dense<0.000000e+00> : vector<16x73xf32>
    %67 = tpu.matmul %66, %65, %cst_35 {dimension_numbers = #tpu.dot_dimension_numbers<[1], [0], [0], [1], [0, 0, 1, 1], [], []>} : vector<16x144xbf16>, vector<144x73xbf16>, vector<16x73xf32> -> vector<16x73xf32>
    %c0_36 = arith.constant 0 : index
    %c0_37 = arith.constant 0 : index
    %68 = vector.load %arg7[%c0_36, %c0_37] : memref<16x1xf32, #tpu.memory_space<vmem>>, vector<16x1xf32>
    %69 = vector.broadcast %68 : vector<16x1xf32> to vector<16x73xf32>
    %70 = arith.addf %67, %69 : vector<16x73xf32>
    %cst_38 = arith.constant 0.000000e+00 : f32
    %71 = vector.broadcast %cst_38 : f32 to vector<16x73xf32>
    %72 = arith.cmpf ogt, %70, %71 : vector<16x73xf32>
    %73 = math.exp %70 : vector<16x73xf32>
    %cst_39 = arith.constant 1.000000e+00 : f32
    %74 = vector.broadcast %cst_39 : f32 to vector<16x73xf32>
    %75 = arith.subf %73, %74 : vector<16x73xf32>
    %76 = arith.select %72, %70, %75 : vector<16x73xi1>, vector<16x73xf32>
    %c0_40 = arith.constant 0 : index
    %c0_41 = arith.constant 0 : index
    %77 = vector.load %arg8[%c0_40, %c0_41] : memref<16x73xf32, #tpu.memory_space<vmem>>, vector<16x73xf32>
    %78 = arith.mulf %76, %77 : vector<16x73xf32>
    %cst_42 = arith.constant dense<0.000000e+00> : vector<16xf32>
    %79 = vector.multi_reduction <add>, %78, %cst_42 [1] : vector<16x73xf32> to vector<16xf32>
    %80 = vector.shape_cast %79 : vector<16xf32> to vector<16x1xf32>
    %cst_43 = arith.constant dense<0.000000e+00> : vector<1xf32>
    %81 = vector.multi_reduction <add>, %80, %cst_43 [0] : vector<16x1xf32> to vector<1xf32>
    %82 = vector.shape_cast %81 : vector<1xf32> to vector<1x1xf32>
    %83 = arith.index_cast %arg0 : i32 to index
    %84 = memref.load %arg1[%83] : memref<8xf32, #tpu.memory_space<smem>>
    %c0_44 = arith.constant 0 : index
    %85 = memref.load %arg2[%c0_44] : memref<2xf32, #tpu.memory_space<smem>>
    %86 = arith.mulf %84, %85 : f32
    %87 = vector.broadcast %86 : f32 to vector<1x1xf32>
    %88 = arith.addf %82, %87 : vector<1x1xf32>
    %c1_45 = arith.constant 1 : index
    %89 = memref.load %arg2[%c1_45] : memref<2xf32, #tpu.memory_space<smem>>
    %90 = vector.broadcast %89 : f32 to vector<1x1xf32>
    %91 = arith.addf %88, %90 : vector<1x1xf32>
    %cst_46 = arith.constant -2.000000e+00 : f32
    %cst_47 = arith.constant 2.000000e+00 : f32
    %92 = vector.broadcast %cst_46 : f32 to vector<1x1xf32>
    %93 = arith.maximumf %92, %91 : vector<1x1xf32>
    %94 = vector.broadcast %cst_47 : f32 to vector<1x1xf32>
    %95 = arith.minimumf %94, %93 : vector<1x1xf32>
    %96 = vector.shape_cast %95 : vector<1x1xf32> to vector<1x1x1xf32>
    %97 = vector.shape_cast %96 : vector<1x1x1xf32> to vector<1x1x1xf32>
    %98 = vector.broadcast %97 : vector<1x1x1xf32> to vector<1x1x128xf32>
    %c0_48 = arith.constant 0 : index
    %c0_49 = arith.constant 0 : index
    %c0_50 = arith.constant 0 : index
    %99 = vector.load %arg9[%c0_48, %c0_49, %c0_50] : memref<1x1x128xf32, #tpu.memory_space<vmem>>, vector<1x1x128xf32>
    tpu.vector_store %arg9[%c0_48, %c0_49, %c0_50], %98 {strides = array<i32>} : memref<1x1x128xf32, #tpu.memory_space<vmem>>, vector<1x1x128xf32>,
    return
  }
  func.func @transform_0(%arg0: i32) -> i32 {
    %c0_i32 = arith.constant 0 : i32
    %c0_i32_0 = arith.constant 0 : i32
    return %c0_i32 : i32
  }
  func.func @transform_1(%arg0: i32) -> i32 {
    %c0_i32 = arith.constant 0 : i32
    %c0_i32_0 = arith.constant 0 : i32
    return %c0_i32 : i32
  }
  func.func @transform_2(%arg0: i32) -> (i32, i32, i32) {
    %c0_i32 = arith.constant 0 : i32
    %c0_i32_0 = arith.constant 0 : i32
    %c0_i32_1 = arith.constant 0 : i32
    return %arg0, %c0_i32, %c0_i32_0 : i32, i32, i32
  }
  func.func @transform_3(%arg0: i32) -> (i32, i32, i32) {
    %c0_i32 = arith.constant 0 : i32
    %c0_i32_0 = arith.constant 0 : i32
    %c0_i32_1 = arith.constant 0 : i32
    %c0_i32_2 = arith.constant 0 : i32
    return %c0_i32, %c0_i32_0, %c0_i32_1 : i32, i32, i32
  }
  func.func @transform_4(%arg0: i32) -> (i32, i32) {
    %c0_i32 = arith.constant 0 : i32
    %c0_i32_0 = arith.constant 0 : i32
    %c0_i32_1 = arith.constant 0 : i32
    return %c0_i32, %c0_i32_0 : i32, i32
  }
  func.func @transform_5(%arg0: i32) -> (i32, i32) {
    %c0_i32 = arith.constant 0 : i32
    %c0_i32_0 = arith.constant 0 : i32
    %c0_i32_1 = arith.constant 0 : i32
    return %c0_i32, %c0_i32_0 : i32, i32
  }
  func.func @transform_6(%arg0: i32) -> (i32, i32) {
    %c0_i32 = arith.constant 0 : i32
    %c0_i32_0 = arith.constant 0 : i32
    %c0_i32_1 = arith.constant 0 : i32
    return %c0_i32, %c0_i32_0 : i32, i32
  }
  func.func @transform_7(%arg0: i32) -> (i32, i32) {
    %c0_i32 = arith.constant 0 : i32
    %c0_i32_0 = arith.constant 0 : i32
    %c0_i32_1 = arith.constant 0 : i32
    return %c0_i32, %c0_i32_0 : i32, i32
  }
  func.func @transform_8(%arg0: i32) -> (i32, i32, i32) {
    %c0_i32 = arith.constant 0 : i32
    %c0_i32_0 = arith.constant 0 : i32
    %c0_i32_1 = arith.constant 0 : i32
    return %arg0, %c0_i32, %c0_i32_0 : i32, i32, i32
  }
}

</mosaic_0001>

<bundles_post_ra>
// kernel: intrinsic_forward_batched.1
= control target key start
LH: loop header
LB: loop body
LE: loop exit
PB: predicated region body
PF: predicated region fallthrough
CT: control target
= control target key end

     0   :  { %13 = vsyncpa [#allocation3], 0  ;;  %s1938_s0 = inlined_call_operand.vmem [shape: f32[8], index: 0, kind: input, shape index: {}]   ;;  %s1939_s1 = inlined_call_operand.vmem [shape: f32[2], index: 1, kind: input, shape index: {}]   ;;  %s1940_s2 = inlined_call_operand.vmem [shape: f32[8,3,121], index: 2, kind: input, shape index: {}]   ;;  %s1941_s3 = inlined_call_operand.vmem [shape: f32[9,16,3], index: 3, kind: input, shape index: {}]   ;;  %s1942_s4 = inlined_call_operand.vmem [shape: f32[16,1], index: 4, kind: input, shape index: {}]   ;;  %s1943_s5 = inlined_call_operand.vmem [shape: bf16[16,144], index: 5, kind: input, shape index: {}]   ;;  %s1944_s6 = inlined_call_operand.vmem [shape: f32[16,1], index: 6, kind: input, shape index: {}]   ;;  %s1945_s7 = inlined_call_operand.vmem [shape: f32[16,73], index: 7, kind: input, shape index: {}]   ;;  %s1946_s8 = inlined_call_operand.vmem [shape: f32[8,1,128], index: 8, kind: output, shape index: {}]  }
   0x1   :  { %14 = vsyncpa [#allocation5], 0  ;;  %s1736_s27 = smov 0  }
   0x2 LB: > { %s1742_s28 = sadd.s32 4294967295, %s1678_s27   ;;  %p1391_p0 = scmp.ge.s32.totalorder %s1678_s27, 1  ;;  %s1678_s27 = sphi %s1736_s27, %s20_s27  }
   0x3   : > { %p224_p1 = scmp.lt.s32.totalorder %s1678_s27, 9  ;;  %s237_s9 = sshll.u32 %s1938_s0, 4  ;;  %s238_s9 = int_to_ptr.vmem [resolvable:$true] %s237_s9 }
   0x4   : > { %p1947_p3 = scmp.eq.s32.totalorder %s1742_s28, 0  ;;  %s248_s13 = sshll.u32 %s1939_s1, 4  ;;  %s249_s13 = int_to_ptr.vmem [resolvable:$true] %s248_s13 }
   0x5   : > { %p1749_p2 = pnand %p1391_p0, %p224_p1  ;;  %s1634_s15 = scalar_lea.vmem %s238_s9, 16 }
   0x6   : > { %p1635_p6 = scmp.ne.s32.totalorder %s238_s9, %s1634_s15  ;;  %p1642_p10 = scmp.lt.s32.totalorder %s238_s9, %s238_s9 }
   0x7   : > { %s1949_s10 = scalar_select %p1749_p2, 1, 0 }
   0x8   : > { %p1551_p4 = pneg %p1749_p2  ;;  %p1643_p11 = scmp.lt.s32.totalorder %s1634_s15, %s1634_s15 }
   0xa   : > { %p1761_p5 = pnand %p1947_p3, %p1551_p4  ;;  %p1644_p12 = por %p1643_p11, %p1642_p10 }
   0xc   : > { %p1636_p7 = pneg %p1761_p5 }
   0xe   : > { %p1637_p8 = pnand %p1636_p7, %p1635_p6 }
  0x10   : > { %p1638_p9 = pneg %p1637_p8 }
  0x12   : > { %p1645_p13 = pnand %p1644_p12, %p1638_p9 }
  0x14   : > { %1648 = shalt.err (!%p1645_p13)
}
  0x15   : > { %s1680_s16 = smov [#allocation2]   ;;  %s1649_s17 = scalar_lea.vmem %s249_s13, 16 }
  0x16   : > { %1554 = dma.vmem_to_smem (!%p1761_p5), %s238_s9, 16, %s1680_s16, [#allocation3]  }
  0x17   : > { %p1650_p0 = scmp.ne.s32.totalorder %s249_s13, %s1649_s17  ;;  %p1657_p3 = scmp.lt.s32.totalorder %s249_s13, %s249_s13 }
  0x18   : > { %p1658_p2 = scmp.lt.s32.totalorder %s1649_s17, %s1649_s17 }
  0x19   : > { %p1652_p1 = pnand %p1650_p0, %p1636_p7 }
  0x1a   : > { %p1659_p6 = por %p1658_p2, %p1657_p3 }
  0x1b   : > { %p1653_p4 = pneg %p1652_p1 }
  0x1d   : > { %p1660_p8 = pnand %p1659_p6, %p1653_p4 }
  0x1f   : > { %1663 = shalt.err (!%p1660_p8)
}
  0x20   : > { %s1681_s18 = smov [#allocation4]   ;;  %p1951_p9 = scmp.ne.s32.totalorder %s1949_s10, 0 }
  0x21   : > { %1557 = dma.vmem_to_smem (!%p1761_p5), %s249_s13, 16, %s1681_s18, [#allocation5]  }
  0x22   : > { %283 = sbr.rel (%p1951_p9) target bundleno = 1017 (0x3f9), region = 52  ;;  %p1952_p10 = scmp.eq.s32.totalorder (!%p1951_p9), %s1742_s28, 0 }
  0x29   : > { %1669 = dma.done.wait (%p1952_p10), [#allocation3], 16   ;;  %p1953_p11 = pmov %p1952_p10 }
  0x2a   : > { %p1954_p7 = pmov %p1952_p10 }
  0x2b   : > { %1671 = vsyncadd (%p1953_p11), [#allocation3], 4294967280 }
  0x2c   : > { %1673 = dma.done.wait (%p1954_p7), [#allocation5], 16   ;;  %p1955_p2 = pmov %p1954_p7 }
  0x2e   : > { %1675 = vsyncadd (%p1955_p2), [#allocation5], 4294967280 }
  0x2f   : > { %293 = sfence }
  0x30   : > { %p319_p3 = scmp.lt.s32.totalorder %s1742_s28, 7  ;;  %v1403_v0 = vld [vmem:[%s1941_s3 + $0x30] sm:$0xff]  ;;  %vm342_vm0 = vcmask 23552   ;;  %s1682_s26 = smov 117   ;;  %v1129_v2 = vld [vmem:[%s1942_s4 + $0x8] sm:$0xff]  ;;  %v1128_v3 = vld [vmem:[%s1942_s4] sm:$0xff] }
  0x31   : > { %1482 = vmatprep.mubr.msk.f32.mxu0 %vm342_vm0, %v1403_v0  ;;  %s1683_s29 = smov 127   ;;  %s1684_s30 = smov 116   ;;  %v1690_v4 = vmov 0   ;;  %vm349_vm1 = vcmask 1042432   ;;  %v1404_v6 = vld [vmem:[%s1941_s3 + $0x38] sm:$0xff]  ;;  %v328_v7 = vld [vmem:[%s1941_s3] sm:$0xff] }
  0x32   : > { %s1787_s21 = scalar_select %p319_p3, %s1742_s28, 7  ;;  %1582 = vset.pattern.permute.xlu1 %v1690_v4  ;;  %1581 = vset.pattern.permute.xlu0 %v1690_v4  ;;  %v329_v9 = vld [vmem:[%s1941_s3 + $0x8] sm:$0xff]  ;;  %v1411_v10 = vld [vmem:[%s1941_s3 + $0x40] sm:$0xff]  ;;  %v1399_v13 = vld [vmem:[%s1941_s3 + $0x10] sm:$0xff]  ;;  %vm1236_vm4 = vcmask 130048   ;;  %vm1295_vm6 = vcmask 596992  }
  0x33   : > { %s1685_s9 = smov 115   ;;  %s1686_s10 = smov 126   ;;  %1240 = vmatprep.subr.bf16.mxu1 %v1690_v4  ;;  %v1412_v12 = vld [vmem:[%s1941_s3 + $0x48] sm:$0xff]  ;;  %v1400_v15 = vld [vmem:[%s1941_s3 + $0x18] sm:$0xff]  ;;  %v1419_v16 = vld [vmem:[%s1941_s3 + $0x50] sm:$0xff] }
  0x34   : > { %s1398_s22 = sshll.u32 %s1787_s21, 2  ;;  %s1687_s11 = smov 106   ;;  %v1420_v18 = vld [vmem:[%s1941_s3 + $0x58] sm:$0xff]  ;;  %v1401_v19 = vld [vmem:[%s1941_s3 + $0x20] sm:$0xff]  ;;  %v1402_v21 = vld [vmem:[%s1941_s3 + $0x28] sm:$0xff] }
  0x35   : > { %s322_s25 = scalar_lea.vmem %s1940_s2, %s1398_s22  ;;  %s1688_s12 = smov 105   ;;  %v1427_v22 = vld [vmem:[%s1941_s3 + $0x60] sm:$0xff]  ;;  %v1428_v24 = vld [vmem:[%s1941_s3 + $0x68] sm:$0xff]  ;;  %v1432_v25 = vld [vmem:[%s1941_s3 + $0x70] sm:$0xff] }
  0x36   : > { %v327_v1 = vld [vmem:[%s322_s25] sm:$0x7]  ;;  %s1689_s13 = smov 104   ;;  %v1433_v27 = vld [vmem:[%s1941_s3 + $0x78] sm:$0xff]  ;;  %v1438_v29 = vld [vmem:[%s1941_s3 + $0x88] sm:$0xff]  ;;  %s1309_s24 = sld [smem:[#allocation2 + %s1742_s28]] }
  0x37   : > { %340 = vrot.lane.b32.xlu0 %v327_v1, %s1682_s26  ;;  %598 = vrot.lane.b32.xlu1 %v327_v1, %s1683_s29  ;;  %v1437_v28 = vld [vmem:[%s1941_s3 + $0x80] sm:$0xff]  ;;  %v1216_v46 = vld [vmem:[%s1944_s6 + $0x8] sm:$0xff]  ;;  %s1310_s25 = sld [smem:[#allocation4]]  ;;  %s1449_s14 = sld [smem:[#allocation4 + $0x1]] }
  0x38   : > { %v1215_v47 = vld [vmem:[%s1944_s6] sm:$0xff]  ;;  %s325_s28 = scalar_lea.vmem %s1946_s8, %s1787_s21 }
  0x39   : > { %v1625_v48 = vld [vmem:[%s1943_s5 + $0x4] ss:$8 sps:$4 sm:$0xff]  }
  0x3a   : > { %1446 = vmatprep.mubr.msk.bf16.mxu1 %vm1236_vm4, %v1625_v48 }
  0x3b   : > { %513 = vrot.lane.b32.xlu0 %v327_v1, %s1684_s30  ;;  %686 = vrot.lane.b32.xlu1 %v327_v1, %s1685_s9 }
  0x3d   : > { %s1311_s15 = smul.f32 %s1310_s25, %s1309_s24 }
  0x3f   : > { %771 = vrot.lane.b32.xlu0 %v327_v1, %s1686_s10  ;;  %859 = vrot.lane.b32.xlu1 %v327_v1, %s1687_s11  ;;  %v1312_v48 = vstv %s1311_s15 }
  0x43   : > { %949 = vrot.lane.b32.xlu0 %v327_v1, %s1688_s12  ;;  %1039 = vrot.lane.b32.xlu1 %v327_v1, %s1689_s13 }
  0x47   : > { %1137 = vperm.xlu1 %1582, %v1129_v2   ;;  %1132 = vperm.xlu0 %1581, %v1128_v3  }
  0xa9   : > { %v341_v5 = vpop.permute.xlu0 %340  ;;  %v599_v11 = vpop.permute.xlu1 %598 }
  0xaa   : > { %1480 = vmatprep.subr.msk.mxu0 %vm349_vm1, %v341_v5 }
  0xab   : > { %1481 = vmatpush3.msk.msra.mxu0 %vm349_vm1, %v341_v5 }
  0xac   : > { %1483 = vmatmul.mubr.msk.f32.vlgmr.msra.gmra.mrb[0].mxu0 %vm342_vm0, %v1404_v6  ;;  %1485 = vmatprep.subr.msk.mxu0 %vm349_vm1, %v327_v1 }
  0xad   : > { %1486 = vmatpush3.msk.msra.mxu0 %vm349_vm1, %v327_v1  ;;  %v514_v8 = vpop.permute.xlu0 %513  ;;  %1487 = vmatprep.mubr.msk.f32.mxu0 %vm342_vm0, %v328_v7  ;;  %v687_v14 = vpop.permute.xlu1 %686 }
  0xae   : > { %1490 = vmatprep.subr.msk.mxu0 %vm349_vm1, %v514_v8 }
  0xb1   : > { %v772_v17 = vpop.permute.xlu0 %771  ;;  %v860_v20 = vpop.permute.xlu1 %859 }
  0xb4   : > { %1488 = vmatmul.mubr.msk.f32.vlgmr.msra.gmra.mrb[0].mxu0 %vm342_vm0, %v329_v9 }
  0xb5   : > { %1491 = vmatpush3.msk.msra.mxu0 %vm349_vm1, %v514_v8  ;;  %1492 = vmatprep.mubr.msk.f32.mxu0 %vm342_vm0, %v1411_v10  ;;  %v950_v23 = vpop.permute.xlu0 %949  ;;  %v1040_v26 = vpop.permute.xlu1 %1039 }
  0xb6   : > { %1495 = vmatprep.subr.msk.mxu0 %vm349_vm1, %v599_v11 }
  0xbc   : > { %1493 = vmatmul.mubr.msk.f32.vlgmr.msra.gmra.mrb[0].mxu0 %vm342_vm0, %v1412_v12 }
  0xbd   : > { %1496 = vmatpush3.msk.msra.mxu0 %vm349_vm1, %v599_v11  ;;  %1497 = vmatprep.mubr.msk.f32.mxu0 %vm342_vm0, %v1399_v13 }
  0xbe   : > { %1500 = vmatprep.subr.msk.mxu0 %vm349_vm1, %v687_v14 }
  0xc4   : > { %1498 = vmatmul.mubr.msk.f32.vlgmr.msra.gmra.mrb[0].mxu0 %vm342_vm0, %v1400_v15 }
  0xc5   : > { %1501 = vmatpush3.msk.msra.mxu0 %vm349_vm1, %v687_v14  ;;  %1502 = vmatprep.mubr.msk.f32.mxu0 %vm342_vm0, %v1419_v16 }
  0xc6   : > { %1505 = vmatprep.subr.msk.mxu0 %vm349_vm1, %v772_v17  ;;  %v1138_v30 = vpop.permute.xlu1 %1137  ;;  %v1133_v31 = vpop.permute.xlu0 %1132 }
  0xcc   : > { %1503 = vmatmul.mubr.msk.f32.vlgmr.msra.gmra.mrb[0].mxu0 %vm342_vm0, %v1420_v18  ;;  %v1623_v18 = vld [vmem:[%s1943_s5] ss:$8 sps:$4 sm:$0xff]  }
  0xcd   : > { %1506 = vmatpush3.msk.msra.mxu0 %vm349_vm1, %v772_v17  ;;  %1507 = vmatprep.mubr.msk.f32.mxu0 %vm342_vm0, %v1401_v19 }
  0xce   : > { %1510 = vmatprep.subr.msk.mxu0 %vm349_vm1, %v860_v20 }
  0xd4   : > { %1508 = vmatmul.mubr.msk.f32.vlgmr.msra.gmra.mrb[0].mxu0 %vm342_vm0, %v1402_v21 }
  0xd5   : > { %1511 = vmatpush3.msk.msra.mxu0 %vm349_vm1, %v860_v20  ;;  %1512 = vmatprep.mubr.msk.f32.mxu0 %vm342_vm0, %v1427_v22 }
  0xd6   : > { %1515 = vmatprep.subr.msk.mxu0 %vm349_vm1, %v950_v23 }
  0xdc   : > { %1513 = vmatmul.mubr.msk.f32.vlgmr.msra.gmra.mrb[0].mxu0 %vm342_vm0, %v1428_v24 }
  0xdd   : > { %1516 = vmatpush3.msk.msra.mxu0 %vm349_vm1, %v950_v23  ;;  %1517 = vmatprep.mubr.msk.f32.mxu0 %vm342_vm0, %v1432_v25 }
  0xde   : > { %1520 = vmatprep.subr.msk.mxu0 %vm349_vm1, %v1040_v26 }
  0xe4   : > { %1518 = vmatmul.mubr.msk.f32.vlgmr.msra.gmra.mrb[0].mxu0 %vm342_vm0, %v1433_v27 }
  0xe5   : > { %1521 = vmatpush3.msk.msra.mxu0 %vm349_vm1, %v1040_v26  ;;  %1522 = vmatprep.mubr.msk.f32.mxu0 %vm342_vm0, %v1437_v28 }
  0xec   : > { %1523 = vmatmul.mubr.msk.f32.vlgmr.msra.gmra.mrb[0].mxu0 %vm342_vm0, %v1438_v29 }
 0x1bf   : > { %v1524_v32 = vpop.f32.mrb[0].mxu0 }
 0x1c0   : > { %v1525_v33 = vadd.f32 %v1524_v32, %v1138_v30  ;;  %v1115_v34 = vpop.f32.mrb[1].mxu0  ;;  %v1291_v30 = vld [vmem:[%s1945_s7] sm:$0xff] }
 0x1c1   : > { %v1526_v35 = vadd.f32 %v1133_v31, %v1115_v34  ;;  %v1292_v34 = vld [vmem:[%s1945_s7 + $0x8] sm:$0xff] }
 0x1c2   : > { %v1148_v36 = vmul.f32 1.442695, %v1525_v33  ;;  %vm1145_vm2 = vcmp.gt.f32.partialorder %v1525_v33, 0.0 }
 0x1c3   : > { %v1146_v37 = vmul.f32 1.442695, %v1526_v35  ;;  %vm1144_vm3 = vcmp.gt.f32.partialorder %v1526_v35, 0.0 }
 0x1c4   : > { %1626 = vpow2.f32 %v1148_v36 }
 0x1c5   : > { %1628 = vpow2.f32 %v1146_v37 }
 0x1ce   : > { %v1627_v38 = vpop.eup %1626 }
 0x1cf   : > { %v1629_v39 = vpop.eup %1628  ;;  %v1443_v40 = vadd.f32 -1.0, %v1627_v38 }
 0x1d0   : > { %v1442_v41 = vadd.f32 -1.0, %v1629_v39 }
 0x1d1   : > { %v1153_v42 = vsel %vm1145_vm2, %v1525_v33, %v1443_v40 }
 0x1d2   : > { %v1152_v43 = vsel %vm1144_vm3, %v1526_v35, %v1442_v41 }
 0x1d3   : > { %v1588_v44 = vpack.i.bf16 %v1153_v42, %v1152_v43  ;;  %v1204_v45 = vpack.c.bf16 %v1153_v42, %v1152_v43 }
 0x1d5   : > { %1589 = vrot.lane.b32.xlu0 %v1588_v44, %s1686_s10  ;;  %1584 = vrot.lane.b32.xlu1 %v1588_v44, %s1683_s29 }
 0x1d6   : > { %1241 = vmatpush1.bf16.msra.mxu1 %v1204_v45 }
 0x1d7   : > { %1242 = vmatprep.subr.bf16.mxu1 %v1690_v4 }
 0x1d9   : > { %1599 = vrot.lane.b32.xlu0 %v1588_v44, %s1684_s30  ;;  %1594 = vrot.lane.b32.xlu1 %v1588_v44, %s1682_s26 }
 0x1dd   : > { %1609 = vrot.lane.b32.xlu0 %v1588_v44, %s1687_s11  ;;  %1604 = vrot.lane.b32.xlu1 %v1588_v44, %s1685_s9 }
 0x1e1   : > { %1619 = vrot.lane.b32.xlu0 %v1588_v44, %s1689_s13  ;;  %1614 = vrot.lane.b32.xlu1 %v1588_v44, %s1688_s12 }
 0x1e5   : > { %1224 = vperm.xlu0 %1581, %v1216_v46   ;;  %1219 = vperm.xlu1 %1582, %v1215_v47  }
 0x247   : > { %v1590_v49 = vpop.permute.xlu0 %1589  ;;  %v1585_v50 = vpop.permute.xlu1 %1584 }
 0x248   : > { %v1587_v51 = vunpack.i.h.bf16 %v1585_v50  ;;  %v1586_v52 = vunpack.i.l.bf16 %v1585_v50  ;;  %v1592_v53 = vunpack.i.h.bf16 %v1590_v49  ;;  %v1591_v54 = vunpack.i.l.bf16 %v1590_v49 }
 0x249   : > { %v1315_v50 = vstv %s1449_s14 }
 0x24a   : > { %v1205_v55 = vpack.c.bf16 %v1587_v51, %v1586_v52  ;;  %v1206_v57 = vpack.c.bf16 %v1592_v53, %v1591_v54 }
 0x24b   : > { %v1595_v56 = vpop.permute.xlu1 %1594  ;;  %v1600_v60 = vpop.permute.xlu0 %1599 }
 0x24c   : > { %1243 = vmatpush1.bf16.msra.mxu1 %v1205_v55  ;;  %v1597_v58 = vunpack.i.h.bf16 %v1595_v56  ;;  %v1596_v59 = vunpack.i.l.bf16 %v1595_v56  ;;  %v1602_v61 = vunpack.i.h.bf16 %v1600_v60  ;;  %v1601_v62 = vunpack.i.l.bf16 %v1600_v60 }
 0x24d   : > { %1244 = vmatprep.subr.bf16.mxu1 %v1690_v4 }
 0x24e   : > { %v1207_v63 = vpack.c.bf16 %v1597_v58, %v1596_v59  ;;  %v1208_v1 = vpack.c.bf16 %v1602_v61, %v1601_v62 }
 0x24f   : > { %v1605_v0 = vpop.permute.xlu1 %1604  ;;  %v1610_v5 = vpop.permute.xlu0 %1609 }
 0x250   : > { %1245 = vmatpush1.bf16.msra.mxu1 %v1206_v57  ;;  %v1607_v2 = vunpack.i.h.bf16 %v1605_v0  ;;  %v1606_v3 = vunpack.i.l.bf16 %v1605_v0  ;;  %v1612_v6 = vunpack.i.h.bf16 %v1610_v5  ;;  %v1611_v7 = vunpack.i.l.bf16 %v1610_v5 }
 0x251   : > { %1246 = vmatprep.subr.bf16.mxu1 %v1690_v4 }
 0x252   : > { %v1209_v8 = vpack.c.bf16 %v1607_v2, %v1606_v3  ;;  %v1210_v10 = vpack.c.bf16 %v1612_v6, %v1611_v7 }
 0x253   : > { %v1615_v9 = vpop.permute.xlu1 %1614  ;;  %v1620_v13 = vpop.permute.xlu0 %1619 }
 0x254   : > { %1247 = vmatpush1.bf16.msra.mxu1 %v1207_v63  ;;  %v1617_v11 = vunpack.i.h.bf16 %v1615_v9  ;;  %v1616_v12 = vunpack.i.l.bf16 %v1615_v9  ;;  %v1622_v14 = vunpack.i.h.bf16 %v1620_v13  ;;  %v1621_v15 = vunpack.i.l.bf16 %v1620_v13 }
 0x255   : > { %1248 = vmatprep.subr.bf16.mxu1 %v1690_v4 }
 0x256   : > { %v1211_v16 = vpack.c.bf16 %v1617_v11, %v1616_v12  ;;  %v1212_v17 = vpack.c.bf16 %v1622_v14, %v1621_v15 }
 0x258   : > { %1249 = vmatpush1.bf16.msra.mxu1 %v1208_v1 }
 0x259   : > { %1250 = vmatprep.subr.bf16.mxu1 %v1690_v4 }
 0x25c   : > { %1251 = vmatpush1.bf16.msra.mxu1 %v1209_v8 }
 0x25d   : > { %1252 = vmatprep.subr.bf16.mxu1 %v1690_v4 }
 0x260   : > { %1253 = vmatpush1.bf16.msra.mxu1 %v1210_v10 }
 0x261   : > { %1254 = vmatprep.subr.bf16.mxu1 %v1690_v4 }
 0x264   : > { %1255 = vmatpush1.bf16.msra.mxu1 %v1211_v16  ;;  %v1220_v19 = vpop.permute.xlu1 %1219  ;;  %v1225_v23 = vpop.permute.xlu0 %1224 }
 0x265   : > { %1256 = vmatprep.subr.bf16.mxu1 %v1690_v4 }
 0x268   : > { %1257 = vmatpush1.bf16.msra.mxu1 %v1212_v17 }
 0x26b   : > { %1273 = vmatmul.mubr.bf16.vlgmr.msra.gmra.mrb[0].mxu1 %v1623_v18 }
 0x33e   : > { %v1274_v20 = vpop.f32.mrb[0].mxu1 }
 0x33f   : > { %v1275_v21 = vadd.f32 %v1274_v20, %v1220_v19  ;;  %v1276_v22 = vpop.f32.mrb[1].mxu1 }
 0x340   : > { %v1277_v24 = vpop.f32.mrb[2].mxu1 }
 0x341   : > { %v1283_v25 = vmul.f32 1.442695, %v1275_v21  ;;  %v1278_v26 = vadd.f32 %v1277_v24, %v1225_v23  ;;  %v1279_v27 = vpop.f32.mrb[3].mxu1  ;;  %vm1281_vm5 = vcmp.gt.f32.partialorder %v1275_v21, 0.0 }
 0x343   : > { %1630 = vpow2.f32 %v1283_v25  ;;  %v1285_v28 = vmul.f32 1.442695, %v1278_v26  ;;  %vm1282_vm7 = vcmp.gt.f32.partialorder %v1278_v26, 0.0 }
 0x345   : > { %1632 = vpow2.f32 %v1285_v28 }
 0x34d   : > { %v1631_v4 = vpop.eup %1630 }
 0x34e   : > { %v1447_v29 = vadd.f32 -1.0, %v1631_v4 }
 0x34f   : > { %v1633_v31 = vpop.eup %1632 }
 0x350   : > { %v1289_v32 = vsel %vm1281_vm5, %v1275_v21, %v1447_v29  ;;  %v1448_v33 = vadd.f32 -1.0, %v1633_v31 }
 0x351   : > { %v1293_v35 = vmul.f32 %v1291_v30, %v1289_v32 }
 0x352   : > { %v1290_v36 = vsel %vm1282_vm7, %v1278_v26, %v1448_v33 }
 0x353   : > { %v1296_v37 = vsel %vm1295_vm6, %v1293_v35, 0.0  ;;  %v1294_v38 = vmul.f32 %v1292_v34, %v1290_v36 }
 0x354   : > { %1297 = vadd.xlane.f32.xlu1 %v1296_v37 }
 0x355   : > { %v1299_v39 = vsel %vm1295_vm6, %v1294_v38, 0.0 }
 0x356   : > { %1300 = vadd.xlane.f32.xlu0 %v1299_v39 }
 0x3e1   : > { %v1298_v40 = vpop.xlane.xlu1 %1297 }
 0x3e3   : > { %v1301_v41 = vpop.xlane.xlu0 %1300 }
 0x3e4   : > { %v1302_v42 = vadd.f32 %v1301_v41, %v1298_v40 }
 0x3e6   : > { %v1303_v43 = vrot.slane %v1302_v42, 4 }
 0x3e8   : > { %v1304_v44 = vadd.f32 %v1303_v43, %v1302_v42 }
 0x3ea   : > { %v1305_v45 = vrot.slane %v1304_v44, 2 }
 0x3ec   : > { %v1306_v46 = vadd.f32 %v1305_v45, %v1304_v44 }
 0x3ee   : > { %v1307_v47 = vrot.slane %v1306_v46, 1 }
 0x3f0   : > { %v1308_v49 = vadd.f32 %v1307_v47, %v1306_v46 }
 0x3f2   : > { %v1313_v51 = vadd.f32 %v1312_v48, %v1308_v49 }
 0x3f4   : > { %v1316_v52 = vadd.f32 %v1315_v50, %v1313_v51 }
 0x3f6   : > { %v1450_v53 = vclamps-f32 %v1316_v52, 2.0 }
 0x3f8   : > { %1319 = vst [vmem:[%s325_s28] sm:$0x1] %v1450_v53 }
 0x3f9 PF: > { %s20_s27 = sadd.s32 1, %s1678_s27  }
 0x3fa   : > { %p17_p5 = scmp.ge.s32.totalorder %s20_s27, 10  }
 0x3fc   :  { %19 = sbr.rel (!%p17_p5) target bundleno = 2 (0x2), region = 99 }
 0x403   :  { %1337 = vsyncpa [#allocation3], 1 }
 0x404   :  { %1339 = vsyncpa [#allocation3 + $0x1], 1 }
 0x405   :  { %1340 = vsyncpa [#allocation5], 1 }

</bundles_post_ra>
